<compile_context>
chip_gen: v6e
topology: v6e:2x2x1
jax: 0.10.0
libtpu: 0.0.40
codegen_flags: <defaults>
</compile_context>

<pallas_src>
import jax
import jax.numpy as jnp
from jax.experimental import pallas as pl
from jax.experimental.pallas import tpu as pltpu


def _scaled_potential_kernel(xT_ref, aT_ref, b_ref, o_ref):
    # xT_ref: (D, TM) tile of transposed inputs (lane-dense, VMEM)
    # aT_ref: (D, D)  folded matrix = (0.5*scale) * A^T (VMEM, replicated)
    # b_ref : (D, 1)  folded linear term = scale * b    (VMEM, replicated)
    # o_ref : (1, TM) lane-dense output row
    xT = xT_ref[...]                                               # (D, TM) f32
    aT = aT_ref[...]                                               # (D, D)  f32
    b = b_ref[...]                                                 # (D, 1)  f32

    # zT[d, n] = 0.5*scale * sum_k A[k, d] * x[n, k] + scale * b[d]
    zT = jnp.dot(aT, xT, preferred_element_type=jnp.float32) + b   # MXU: (D, TM)
    # out[n] = sum_d x[n, d] * zT[d, n]  (cheap 16-sublane reduction, lane-dense)
    o_ref[...] = jnp.sum(xT * zT, axis=0, keepdims=True)           # (1, TM)


def scaled_potential(x, A, b, scale, *, tm_cap=16384):
    """scale * (0.5 * x^T A x + b^T x), per row of x. Returns (N, 1) float32."""
    N, D = x.shape

    # Tile sizing: lane-dense (D, TM) tiles are tiny (1 MiB at TM=16384), so
    # cap high; aim for a grid of >= 2 when the batch allows it so both v7x
    # TensorCores get work (no effect on single-TC v5e/v6e).
    n_pad128 = pl.cdiv(N, 128) * 128
    tm = min(int(tm_cap), 128 * pl.cdiv(n_pad128, 2 * 128))
    tm = max(128, (tm // 128) * 128)

    grid = pl.cdiv(N, tm)
    n_padded = grid * tm

    # Transposed, lane-dense input layout: (D, N) with batch on lanes.
    # TODO(synk): if the upstream producer can emit x already as (D, N), this
    # wrapper transpose (one extra XLA pass over x) goes away.
    xT = jnp.transpose(x.astype(jnp.float32))                      # (D, N)
    if n_padded != N:
        # Zero columns contribute exactly 0; sliced off below.
        xT = jnp.pad(xT, ((0, 0), (0, n_padded - N)))

    # Fold 0.5 and scale into the parameters (O(D^2) wrapper work).
    A_foldT = (0.5 * float(scale)) * jnp.transpose(A.astype(jnp.float32))  # (D, D)
    b_fold = (float(scale) * jnp.reshape(b, (D, 1))).astype(jnp.float32)   # (D, 1)

    out = pl.pallas_call(
        _scaled_potential_kernel,
        out_shape=jax.ShapeDtypeStruct((1, n_padded), jnp.float32),
        grid=(grid,),
        in_specs=[
            pl.BlockSpec((D, tm), lambda i: (0, i)),   # xT tile (lane-dense)
            pl.BlockSpec((D, D), lambda i: (0, 0)),    # folded A^T (replicated)
            pl.BlockSpec((D, 1), lambda i: (0, 0)),    # folded b   (replicated)
        ],
        out_specs=pl.BlockSpec((1, tm), lambda i: (0, i)),  # lane-dense row slab
        compiler_params=pltpu.CompilerParams(
            dimension_semantics=("parallel",)),
    )(xT, A_foldT, b_fold)

    return out.reshape(n_padded, 1)[:N]


if __name__ == "__main__":
    key = jax.random.PRNGKey(0)
    kx, ka, kb = jax.random.split(key, 3)

    # Small, module-consistent shapes: ragged batch (not a multiple of 128),
    # dim-16 potential, scale >= 0 as ScaledPotential requires.  With these
    # sizes the tile-sizing rule yields tm=256, grid=2, exercising multiple
    # grid steps plus the ragged-batch padding path.
    N, D = 300, 16
    scale = 2.5

    x = jax.random.normal(kx, (N, D), dtype=jnp.float32)
    # Deterministic inner-potential parameters (symmetric PSD-ish A).
    A_raw = jax.random.normal(ka, (D, D), dtype=jnp.float32) * 0.1
    A = 0.5 * (A_raw + A_raw.T) + jnp.eye(D, dtype=jnp.float32)
    b = jax.random.normal(kb, (1, D), dtype=jnp.float32) * 0.1

    out = scaled_potential(x, A, b, scale)
    out = jax.block_until_ready(out)

    # Pure-JAX reference of the same forward pass.
    ref = scale * (0.5 * jnp.sum((x @ A) * x, axis=-1, keepdims=True)
                   + jnp.sum(x * b, axis=-1, keepdims=True))
    assert out.shape == (N, 1)
    assert jnp.allclose(out, ref, rtol=1e-5, atol=1e-5), "mismatch vs reference"

    # TODO(synk): BasePotential.push / push_nograd (autograd of the potential)
    # are gradient-time utilities and are not part of this forward kernel.

    print("KERNEL_OK")
</pallas_src>

<mosaic_0001>
module attributes {stable_mosaic.version = 11 : i64} {
  func.func @_scaled_potential_kernel(%arg0: i32, %arg1: memref<16x256xf32, #tpu.memory_space<vmem>>, %arg2: memref<16x16xf32, #tpu.memory_space<vmem>>, %arg3: memref<16x1xf32, #tpu.memory_space<vmem>>, %arg4: memref<1x256xf32, #tpu.memory_space<vmem>>) attributes {dimension_semantics = [#tpu.dimension_semantics<parallel>], iteration_bounds = array<i64: 2>, scalar_prefetch = 0 : i64, scratch_operands = 0 : i64, tpu.core_type = #tpu.core_type<tc>, window_params = [{transform_indices = @transform_0, window_bounds = array<i64: 16, 256>}, {pipeline_mode = #tpu.pipeline_mode<synchronous>, transform_indices = @transform_1, window_bounds = array<i64: 16, 16>}, {pipeline_mode = #tpu.pipeline_mode<synchronous>, transform_indices = @transform_2, window_bounds = array<i64: 16, 1>}, {transform_indices = @transform_3, window_bounds = array<i64: 1, 256>}]} {
    %c0 = arith.constant 0 : index
    %c0_0 = arith.constant 0 : index
    %0 = vector.load %arg1[%c0, %c0_0] : memref<16x256xf32, #tpu.memory_space<vmem>>, vector<16x256xf32>
    %c0_1 = arith.constant 0 : index
    %c0_2 = arith.constant 0 : index
    %1 = vector.load %arg2[%c0_1, %c0_2] : memref<16x16xf32, #tpu.memory_space<vmem>>, vector<16x16xf32>
    %c0_3 = arith.constant 0 : index
    %c0_4 = arith.constant 0 : index
    %2 = vector.load %arg3[%c0_3, %c0_4] : memref<16x1xf32, #tpu.memory_space<vmem>>, vector<16x1xf32>
    %cst = arith.constant dense<0.000000e+00> : vector<16x256xf32>
    %3 = tpu.matmul %1, %0, %cst {dimension_numbers = #tpu.dot_dimension_numbers<[1], [0], [0], [1], [0, 0, 1, 1], [], []>} : vector<16x16xf32>, vector<16x256xf32>, vector<16x256xf32> -> vector<16x256xf32>
    %4 = vector.broadcast %2 : vector<16x1xf32> to vector<16x256xf32>
    %5 = arith.addf %3, %4 : vector<16x256xf32>
    %6 = arith.mulf %0, %5 : vector<16x256xf32>
    %cst_5 = arith.constant dense<0.000000e+00> : vector<256xf32>
    %7 = vector.multi_reduction <add>, %6, %cst_5 [0] : vector<16x256xf32> to vector<256xf32>
    %8 = vector.shape_cast %7 : vector<256xf32> to vector<1x256xf32>
    %c0_6 = arith.constant 0 : index
    %c0_7 = arith.constant 0 : index
    %9 = vector.load %arg4[%c0_6, %c0_7] : memref<1x256xf32, #tpu.memory_space<vmem>>, vector<1x256xf32>
    tpu.vector_store %arg4[%c0_6, %c0_7], %8 {strides = array<i32>} : memref<1x256xf32, #tpu.memory_space<vmem>>, vector<1x256xf32>,
    return
  }
  func.func @transform_0(%arg0: i32) -> (i32, i32) {
    %c0_i32 = arith.constant 0 : i32
    %c0_i32_0 = arith.constant 0 : i32
    return %c0_i32, %arg0 : i32, i32
  }
  func.func @transform_1(%arg0: i32) -> (i32, i32) {
    %c0_i32 = arith.constant 0 : i32
    %c0_i32_0 = arith.constant 0 : i32
    %c0_i32_1 = arith.constant 0 : i32
    return %c0_i32, %c0_i32_0 : i32, i32
  }
  func.func @transform_2(%arg0: i32) -> (i32, i32) {
    %c0_i32 = arith.constant 0 : i32
    %c0_i32_0 = arith.constant 0 : i32
    %c0_i32_1 = arith.constant 0 : i32
    return %c0_i32, %c0_i32_0 : i32, i32
  }
  func.func @transform_3(%arg0: i32) -> (i32, i32) {
    %c0_i32 = arith.constant 0 : i32
    %c0_i32_0 = arith.constant 0 : i32
    return %c0_i32, %arg0 : i32, i32
  }
}

</mosaic_0001>

<bundles_post_ra>
// kernel: tpu_custom_call.1
= control target key start
LH: loop header
LB: loop body
LE: loop exit
PB: predicated region body
PF: predicated region fallthrough
CT: control target
= control target key end

     0   :  { %8 = vsyncpa [#allocation3], 0  ;;  %s771_s0 = inlined_call_operand.hbm [shape: f32[16,512], index: 0, kind: input, shape index: {}]   ;;  %s772_s1 = inlined_call_operand.vmem [shape: f32[16,16], index: 1, kind: input, shape index: {}]   ;;  %s773_s2 = inlined_call_operand.vmem [shape: f32[16,1], index: 2, kind: input, shape index: {}]   ;;  %s774_s3 = inlined_call_operand.hbm [shape: f32[1,512], index: 3, kind: output, shape index: {}]  }
   0x1   :  { %10 = vsyncpa [#allocation3 + $0x1], 0 }
   0x2   :  { %11 = vsyncpa [#allocation4], 0 }
   0x3   :  { %13 = vsyncpa [#allocation4 + $0x1], 0  ;;  %s616_s12 = smov 0   ;;  %s618_s13 = smov 0  }
   0x4   :  { %s620_s14 = smov 0   ;;  %s622_s15 = smov 0  }
   0x5 LB: > { %s637_s16 = sadd.s32 4294967295, %s586_s15   ;;  %s419_s17 = sadd.s32 4294967294, %s586_s15   ;;  %s586_s15 = sphi %s622_s15, %s790_s15   ;;  %s582_s14 = sphi %s620_s14, %s789_s14   ;;  %s578_s13 = sphi %s618_s13, %s788_s13   ;;  %s574_s12 = sphi %s616_s12, %s787_s12  }
   0x6   : > { %s641_s18 = sadd.s32 1, %s586_s15   ;;  %s26_s19 = sadd.s32 1, %s582_s14 }
   0x7   : > { %s23_s20 = ssub.s32 %s586_s15, %s641_s18  ;;  %p33_p0 = scmp.ne.s32.totalorder %s582_s14, %s578_s13 }
   0x8   : > { %p24_p1 = scmp.eq.s32.totalorder %s23_s20, 0  ;;  %p34_p2 = scmp.eq.s32.totalorder %s586_s15, 0 }
   0x9   : > { %p39_p3 = scmp.ne.s32.totalorder %s578_s13, %s574_s12  ;;  %p40_p4 = scmp.eq.s32.totalorder %s637_s16, 0 }
   0xa   : > { %s653_s21 = scalar_select %p24_p1, %s582_s14, %s26_s19  }
   0xb   : > { %p655_p5 = por %p34_p2, %p33_p0  ;;  %p659_p6 = por %p40_p4, %p39_p3 }
   0xc   : > { %p105_p7 = scmp.eq.s32.totalorder %s637_s16, 1  ;;  %p111_p8 = scmp.eq.s32.totalorder %s419_s17, 1 }
   0xd   : > { %s778_s23 = scalar_select %p659_p6, 1, 0 }
   0xe   : > { %p453_p10 = scmp.lt.s32.totalorder %s586_s15, 2  ;;  %p666_p11 = por %p105_p7, %p33_p0 }
   0xf   : > { %p670_p12 = por %p111_p8, %p39_p3  ;;  %s137_s26 = sand.u32 1, %s582_s14  }
  0x10   : > { %s779_s24 = scalar_select %p666_p11, 1, 0 }
  0x11   : > { %s780_s25 = scalar_select %p670_p12, 1, 0 }
  0x12   : > { %s435_s27 = sshll.u32 %s586_s15, 8  ;;  %s422_s28 = sshll.u32 %s137_s26, 5 }
  0x13   : > { %s679_s4 = scalar_lea.hbm %s771_s0, %s435_s27  ;;  %s141_s5 = scalar_lea.vmem [#allocation2], %s422_s28 }
  0x14   : > { %s148_s6 = sshll.u32 %s141_s5, 4  ;;  %p683_p13 = pnand %p453_p10, %p655_p5  ;;  %s687_s6 = int_to_ptr.vmem [resolvable:$true] %s148_s6 }
  0x15   : > { %s690_s8 = scalar_lea.sflag [#allocation3], %s137_s26  ;;  %s494_s9 = scalar_lea.hbm %s679_s4, 512 }
  0x16   : > { %p495_p1 = scmp.ne.s32.totalorder %s679_s4, %s494_s9  ;;  %p496_p2 = pneg %p683_p13 }
  0x17   : > { %s499_s17 = scalar_lea.hbm %s771_s0, 1024  ;;  %p500_p5 = scmp.lt.s32.totalorder %s679_s4, %s771_s0 }
  0x18   : > { %p497_p3 = pnand %p496_p2, %p495_p1  ;;  %p501_p7 = scmp.lt.s32.totalorder %s499_s17, %s494_s9 }
  0x1a   : > { %p498_p4 = pneg %p497_p3  ;;  %p502_p8 = por %p501_p7, %p500_p5 }
  0x1c   : > { %p503_p10 = pnand %p502_p8, %p498_p4 }
  0x1e   : > { %506 = shalt.err (!%p503_p10)
}
  0x1f   : > { %s507_s22 = scalar_lea.vmem %s687_s6, 512  ;;  %s588_s26 = smov [#allocation2]  }
  0x20   : > { %p508_p9 = scmp.ne.s32.totalorder %s687_s6, %s507_s22  ;;  %s512_s27 = sshll.u32 %s588_s26, 4  ;;  %s513_s27 = int_to_ptr.vmem [resolvable:$false] %s512_s27 }
  0x21   : > { %s514_s28 = scalar_lea.vmem %s513_s27, 1024  ;;  %p515_p3 = scmp.lt.s32.totalorder %s687_s6, %s513_s27 }
  0x22   : > { %p510_p0 = pnand %p508_p9, %p496_p2  ;;  %p516_p12 = scmp.lt.s32.totalorder %s514_s28, %s507_s22 }
  0x24   : > { %p511_p1 = pneg %p510_p0  ;;  %p517_p11 = por %p516_p12, %p515_p3 }
  0x26   : > { %p518_p6 = pnand %p517_p11, %p511_p1 }
  0x28   : > { %521 = shalt.err (!%p518_p6)
}
  0x29   : > { %s589_s29 = smov 512   ;;  %s590_s30 = smov 256  }
  0x2a   : > { %s591_s5 = smov 16   ;;  %p156_p9 = scmp.lt.s32.totalorder %s586_s15, 3 }
  0x2b   : > { %448 = dma.hbm_to_vmem [thread:$0]  (!%p683_p13), %s679_s4, 512, %s687_s6, %s690_s8, %s589_s29, %s590_s30, %s591_s5  }
  0x2c   : > { %p782_p0 = scmp.ge.s32.totalorder %s586_s15, 1 }
  0x2e   : > { %p157_p2 = pnand %p782_p0, %p156_p9 }
  0x2f   : > { %s715_s9 = sand.u32 (!%p157_p2), 1, %s578_s13   ;;  %p783_p6 = scmp.ne.s32.totalorder (!%p157_p2), %s778_s23, 0 }
  0x30   : > { %160 = sbr.rel (%p157_p2) target bundleno = 293 (0x125), region = 32  ;;  %s426_s10 = sshll.u32 (!%p157_p2), %s715_s9, 5 }
  0x31   : > { %s163_s11 = scalar_lea.sflag (!%p157_p2), [#allocation3], %s715_s9  ;;  %s166_s17 = scalar_lea.vmem (!%p157_p2), [#allocation2], %s426_s10 }
  0x35   : > { %565 = dma.done.wait (%p783_p6), %s163_s11, 512  }
  0x36   : > { %567 = vsyncadd (%p783_p6), %s163_s11, 4294966784  ;;  %v592_v0 = vmov 0.0   ;;  %v593_v1 = vmov 0   ;;  %v194_v2 = vld [vmem:[%s166_s17 + $0x18] sm:$0xff]  ;;  %v193_v3 = vld [vmem:[%s166_s17 + $0x10] sm:$0xff]  ;;  %vm209_vm0 = vcmask 130048   ;;  %v317_v33 = vlaneseq }
  0x37   : > { %280 = vmatprep.mubr.f32.mxu0 %v592_v0  ;;  %286 = vmatprep.mubr.f32.mxu1 %v592_v0  ;;  %v192_v4 = vld [vmem:[%s166_s17 + $0x8] sm:$0xff]  ;;  %v191_v5 = vld [vmem:[%s166_s17] sm:$0xff]  ;;  %v594_v31 = vmov 1966171168   ;;  %s427_s26 = sshll.u32 %s715_s9, 1  ;;  %s436_s27 = sshll.u32 %s637_s16, 5 }
  0x38   : > { %493 = vset.pattern.permute.xlu0 %v593_v1  ;;  %244 = vmatprep.subr.mxu0 %v194_v2  ;;  %v195_v6 = vld [vmem:[%s772_s1] sm:$0xff]  ;;  %v196_v7 = vld [vmem:[%s772_s1 + $0x8] sm:$0xff]  ;;  %v315_v32 = vunpack.c.l.s4 %v594_v31  ;;  %v318_v39 = vshrl.u32 %v317_v33, 7  ;;  %s188_s28 = scalar_lea.vmem [#allocation5], %s427_s26  ;;  %vm331_vm1 = vcmp.lt.s32.totalorder %v317_v33, 256  ;;  %s347_s10 = scalar_lea.hbm %s774_s3, %s436_s27 }
  0x39   : > { %437 = vmatprep.subr.mxu1 %v194_v2  ;;  %245 = vmatpush1.msra.mxu0 %v193_v3  ;;  %v197_v8 = vld [vmem:[%s773_s2] sm:$0xff]  ;;  %v198_v9 = vld [vmem:[%s773_s2 + $0x8] sm:$0xff]  ;;  %s349_s29 = sshll.u32 %s188_s28, 4  ;;  %s335_s11 = scalar_lea.sflag [#allocation4], %s715_s9  ;;  %s350_s29 = int_to_ptr.vmem [resolvable:$true] %s349_s29 }
  0x3a   : > { %439 = vmatpush1.msra.mxu1 %v193_v3  ;;  %246 = vmatprep.subr.mxu0 %v192_v4  ;;  %v316_v38 = vunpack.c.0.s8 %v315_v32  ;;  %s522_s17 = scalar_lea.vmem %s350_s29, 32  ;;  %p784_p12 = scmp.ne.s32.totalorder %s779_s24, 0 }
  0x3b   : > { %438 = vmatprep.subr.mxu1 %v192_v4  ;;  %247 = vmatpush1.msra.mxu0 %v191_v5  ;;  %p523_p11 = scmp.ne.s32.totalorder %s350_s29, %s522_s17  ;;  %s595_s4 = smov [#allocation5]  }
  0x3c   : > { %440 = vmatpush1.msra.mxu1 %v191_v5  ;;  %428 = vmatmul.mubr.msk.f32.vlgmr.msra.gmra.mxu0 %vm209_vm0, %v195_v6  ;;  %v319_v43 = vsub.s32 %v316_v38, %v318_v39  ;;  %s526_s6 = sshll.u32 %s595_s4, 4  ;;  %s527_s6 = int_to_ptr.vmem [resolvable:$false] %s526_s6 }
  0x3d   : > { %429 = vmatmul.mubr.msk.f32.vlgmr.msra.gmra.mxu1 %vm209_vm0, %v196_v7  ;;  %201 = vperm.xlu0 %493, %v197_v8   ;;  %p524_p13 = pnand %p523_p11, %p784_p12  ;;  %s528_s16 = scalar_lea.vmem %s527_s6, 64 }
  0x3e   : > { %p529_p5 = scmp.lt.s32.totalorder %s350_s29, %s527_s6  ;;  %p530_p7 = scmp.lt.s32.totalorder %s528_s16, %s522_s17 }
  0x3f   : > { %p525_p4 = pneg %p524_p13 }
  0x40   : > { %p531_p8 = por %p530_p7, %p529_p5 }
  0x41   : > { %206 = vperm.xlu0 %493, %v198_v9  }
  0x42   : > { %p532_p10 = pnand %p531_p8, %p525_p4 }
  0xb8   : > { %v202_v10 = vpop.permute.xlu0 %201 }
  0xbc   : > { %v207_v11 = vpop.permute.xlu0 %206 }
  0xfc   : > { %v282_v12 = vpop.f32.mrf.mxu0 }
  0xfd   : > { %v288_v13 = vpop.f32.mrf.mxu1  ;;  %v283_v14 = vadd.f32 %v282_v12, %v202_v10 }
  0xfe   : > { %v289_v15 = vadd.f32 %v288_v13, %v207_v11  ;;  %v284_v16 = vpop.f32.mrf.mxu0 }
  0xff   : > { %v290_v17 = vpop.f32.mrf.mxu1  ;;  %v293_v18 = vmul.f32 %v283_v14, %v191_v5  ;;  %v285_v20 = vadd.f32 %v284_v16, %v202_v10 }
 0x100   : > { %v295_v19 = vmul.f32 %v289_v15, %v193_v3  ;;  %v291_v21 = vadd.f32 %v290_v17, %v207_v11 }
 0x101   : > { %v294_v23 = vmul.f32 %v285_v20, %v192_v4 }
 0x102   : > { %v297_v22 = vadd.f32 %v295_v19, %v293_v18  ;;  %v296_v24 = vmul.f32 %v291_v21, %v194_v2 }
 0x104   : > { %v298_v25 = vrot.slane %v297_v22, 4  ;;  %v304_v26 = vadd.f32 %v296_v24, %v294_v23 }
 0x106   : > { %v299_v27 = vadd.f32 %v298_v25, %v297_v22  ;;  %v305_v28 = vrot.slane %v304_v26, 4 }
 0x108   : > { %v300_v29 = vrot.slane %v299_v27, 2  ;;  %v306_v30 = vadd.f32 %v305_v28, %v304_v26 }
 0x10a   : > { %v301_v34 = vadd.f32 %v300_v29, %v299_v27  ;;  %v307_v35 = vrot.slane %v306_v30, 2 }
 0x10c   : > { %v302_v36 = vrot.slane %v301_v34, 1  ;;  %v308_v37 = vadd.f32 %v307_v35, %v306_v30 }
 0x10e   : > { %v309_v40 = vrot.slane %v308_v37, 1  ;;  %v303_v41 = vadd.f32 %v302_v36, %v301_v34 }
 0x110   : > { %v310_v42 = vadd.f32 %v309_v40, %v308_v37 }
 0x112   : > { %v313_v44 = vcombine.low %v303_v41, %v310_v42 }
 0x114   : > { %v320_v45 = vrot.slane %v313_v44, %v319_v43 }
 0x116   : > { %v327_v46 = vrot.slane %v320_v45, %v319_v43 }
 0x118   : > { %333 = vst.msk [vmem:[%s188_s28] sm:$0x3] %vm331_vm1, %v327_v46 }
 0x119   : > { %535 = shalt.err (!%p532_p10)
}
 0x11a   : > { %s536_s23 = scalar_lea.hbm %s347_s10, 32  ;;  %s540_s8 = scalar_lea.hbm %s774_s3, 64 }
 0x11b   : > { %p537_p1 = scmp.ne.s32.totalorder %s347_s10, %s536_s23  ;;  %p541_p0 = scmp.lt.s32.totalorder %s347_s10, %s774_s3 }
 0x11c   : > { %p542_p2 = scmp.lt.s32.totalorder %s540_s8, %s536_s23 }
 0x11d   : > { %p538_p3 = pnand %p537_p1, %p784_p12 }
 0x11e   : > { %p543_p6 = por %p542_p2, %p541_p0 }
 0x11f   : > { %p539_p9 = pneg %p538_p3 }
 0x121   : > { %p544_p11 = pnand %p543_p6, %p539_p9 }
 0x123   : > { %547 = shalt.err (!%p544_p11)
}
 0x124   : > { %443 = dma.vmem_to_hbm [thread:$0]  (%p784_p12), %s350_s29, 32, %s347_s10, %s335_s11  }
 0x125 PF: > { %s361_s22 = sand.u32 1, %s574_s12   ;;  %p785_p13 = scmp.ne.s32.totalorder %s780_s25, 0 }
 0x126   : > { %p786_p4 = scmp.ge.s32.totalorder %s586_s15, 2  ;;  %s362_s26 = scalar_lea.sflag [#allocation4], %s361_s22 }
 0x128   : > { %p450_p5 = pnand %p786_p4, %p785_p13 }
 0x12a   : > { %p451_p7 = pneg %p450_p5 }
 0x12c   : > { %569 = dma.done.wait (%p451_p7), %s362_s26, 32  }
 0x12d   : > { %571 = vsyncadd (%p451_p7), %s362_s26, 4294967264  ;;  %p16_p8 = scmp.ge.s32.totalorder %s641_s18, 4   ;;  %s787_s12 = smov %s578_s13 }
 0x12e   : > { %s788_s13 = smov %s582_s14  ;;  %s789_s14 = smov %s653_s21 }
 0x12f   : > { %s790_s15 = smov %s641_s18  ;;  %18 = sbr.rel (!%p16_p8) target bundleno = 5 (0x5), region = 77 }
 0x134   :  { %367 = vsyncpa [#allocation3], 1 }
 0x135   :  { %369 = vsyncpa [#allocation3 + $0x1], 1 }
 0x136   :  { %370 = vsyncpa [#allocation4], 1 }
 0x137   :  { %372 = vsyncpa [#allocation4 + $0x1], 1 }

</bundles_post_ra>
